<compile_context>
chip_gen: v7x
topology: tpu7x:2x2x1
jax: 0.10.0
libtpu: 0.0.40
codegen_flags: <defaults>
</compile_context>

<pallas_src>
import jax
import jax.numpy as jnp
from jax.experimental import pallas as pl
from jax.experimental.pallas import tpu as pltpu

LOG_SIG_MAX = 2.0
LOG_SIG_MIN = -20.0
LANE = 128
SUBLANE = 8


def _round_up(x, m):
    return ((x + m - 1) // m) * m


def sac_actor_kernel(x_ref, w1_ref, b1_ref, w2_ref, b2_ref, wh_ref, bh_ref,
                     lo_ref, hi_ref, out_ref):
    # Load the batch tile; cast to the MXU operand dtype (f32 or bf16).
    x = x_ref[...].astype(w1_ref.dtype)

    # fc1 + ReLU (accumulate in f32, elementwise in f32)
    h1 = jnp.dot(x, w1_ref[...], preferred_element_type=jnp.float32) + b1_ref[...]
    h1 = jnp.maximum(h1, 0.0)

    # fc2 + ReLU
    h2 = jnp.dot(h1.astype(w2_ref.dtype), w2_ref[...],
                 preferred_element_type=jnp.float32) + b2_ref[...]
    h2 = jnp.maximum(h2, 0.0)

    # Fused heads: one matmul producing [TB, head_cols] where
    #   columns [0, out)      -> mean
    #   columns [out, 2*out)  -> log_std (clamped)
    #   columns [2*out, ...)  -> zero padding (dropped in the wrapper)
    head = jnp.dot(h2.astype(wh_ref.dtype), wh_ref[...],
                   preferred_element_type=jnp.float32) + bh_ref[...]

    # Precomputed per-column clamp bounds: -inf/+inf on mean & pad columns,
    # LOG_SIG_MIN/LOG_SIG_MAX on log_std columns.  Two VPU ops total.
    head = jnp.minimum(jnp.maximum(head, lo_ref[...]), hi_ref[...])

    out_ref[...] = head.astype(out_ref.dtype)


def prepare_params(params, compute_dtype=jnp.float32):
    """One-time layout prep (call once, outside the hot path).

    Transposes PyTorch-convention [out, in] weights to [in, out], zero-pads
    `hidden` to a multiple of 128 (exact through bias/ReLU/dots), fuses and
    lane-pads the two head layers, lifts biases to [1, cols], builds the
    per-column clamp vectors, and casts the matmul operands to compute_dtype.
    """
    in_size = params["fc1_w"].shape[1]
    hidden = params["fc1_w"].shape[0]
    out_size = params["mean_w"].shape[0]

    hidden_pad = _round_up(hidden, LANE)
    hp = hidden_pad - hidden
    head_cols = _round_up(2 * out_size, LANE)
    cp = head_cols - 2 * out_size

    w1 = jnp.pad(params["fc1_w"].T, ((0, 0), (0, hp))).astype(compute_dtype)
    b1 = jnp.pad(params["fc1_b"], (0, hp))[None, :].astype(jnp.float32)
    w2 = jnp.pad(params["fc2_w"].T, ((0, hp), (0, hp))).astype(compute_dtype)
    b2 = jnp.pad(params["fc2_b"], (0, hp))[None, :].astype(jnp.float32)

    wh = jnp.concatenate([params["mean_w"].T, params["log_std_w"].T], axis=1)
    wh = jnp.pad(wh, ((0, hp), (0, cp))).astype(compute_dtype)
    bh = jnp.concatenate([params["mean_b"], params["log_std_b"]])
    bh = jnp.pad(bh, (0, cp))[None, :].astype(jnp.float32)

    col = jnp.arange(head_cols)
    is_log_std = (col >= out_size) & (col < 2 * out_size)
    lo = jnp.where(is_log_std, LOG_SIG_MIN, -jnp.inf)[None, :].astype(jnp.float32)
    hi = jnp.where(is_log_std, LOG_SIG_MAX, jnp.inf)[None, :].astype(jnp.float32)

    return {
        "w1": w1, "b1": b1, "w2": w2, "b2": b2, "wh": wh, "bh": bh,
        "lo": lo, "hi": hi,
        "in_size": in_size, "out_size": out_size,
        "hidden_pad": hidden_pad, "head_cols": head_cols,
    }


def sac_actor_forward(state, prepped, *, batch_tile=1024, out_dtype=jnp.float32):
    """state: [B, input_size] f32. Returns (mean, log_std), both [B, out_size]."""
    B, in_size = state.shape
    out_size = prepped["out_size"]
    head_cols = prepped["head_cols"]
    hidden_pad = prepped["hidden_pad"]

    out_itemsize = jnp.dtype(out_dtype).itemsize
    # Row alignment: 8 (f32 sublane) or 16 if the output tile is 16-bit packed.
    row_align = 16 if out_itemsize == 2 else SUBLANE

    # Batch tiling: pad B to the alignment, then
    #   * if it fits in <= 2 tiles, split into (up to) 2 tiles so the grid has
    #     >= 2 steps -> both v7x TensorCores get work (no-op cost on v5e/v6e);
    #   * otherwise use the (large) batch_tile to amortize per-step overhead.
    B_al = _round_up(B, row_align)
    if B_al <= 2 * batch_tile:
        if B_al >= 2 * row_align:
            TB = _round_up(-(-B_al // 2), row_align)
        else:
            TB = B_al
    else:
        TB = _round_up(batch_tile, row_align)
    B_pad = _round_up(B_al, TB)
    if B_pad != B:
        state = jnp.pad(state, ((0, B_pad - B), (0, 0)))

    grid = (B_pad // TB,)

    w1, b1 = prepped["w1"], prepped["b1"]
    w2, b2 = prepped["w2"], prepped["b2"]
    wh, bh = prepped["wh"], prepped["bh"]
    lo, hi = prepped["lo"], prepped["hi"]

    def resident(a):
        # Same block every grid step -> DMA'd once; single-buffered so large
        # weights don't double their VMEM footprint.
        return pl.BlockSpec(a.shape, lambda i: (0,) * a.ndim,
                            pipeline_mode=pl.Buffered(1))

    residents = (w1, b1, w2, b2, wh, bh, lo, hi)
    param_bytes = sum(
        int(a.size) * jnp.dtype(a.dtype).itemsize for a in residents)

    # VMEM budget: single-buffered params + double-buffered in/out batch tiles
    # + f32 intermediates, with slack.  Cap at 64 MiB (v7x physical VMEM).
    act_bytes = 2 * (TB * in_size * 4) + 2 * (TB * head_cols * out_itemsize)
    interm_bytes = 2 * TB * hidden_pad * 4 + TB * head_cols * 4
    vmem_need = param_bytes + act_bytes + interm_bytes
    vmem_limit = min(max(32 << 20, int(vmem_need * 1.5)), 64 << 20)

    flops = 2 * B_pad * (in_size * hidden_pad
                         + hidden_pad * hidden_pad
                         + hidden_pad * head_cols)
    bytes_accessed = (B_pad * in_size * 4) + param_bytes \
        + (B_pad * head_cols * out_itemsize)

    fused = pl.pallas_call(
        sac_actor_kernel,
        out_shape=jax.ShapeDtypeStruct((B_pad, head_cols), out_dtype),
        grid=grid,
        in_specs=[
            pl.BlockSpec((TB, in_size), lambda i: (i, 0)),   # state: tiled on batch
            resident(w1), resident(b1),
            resident(w2), resident(b2),
            resident(wh), resident(bh),
            resident(lo), resident(hi),
        ],
        out_specs=pl.BlockSpec((TB, head_cols), lambda i: (i, 0)),
        compiler_params=pltpu.CompilerParams(
            dimension_semantics=("parallel",),
            vmem_limit_bytes=vmem_limit),
        cost_estimate=pl.CostEstimate(
            flops=int(flops), transcendentals=0,
            bytes_accessed=int(bytes_accessed)),
    )(state, w1, b1, w2, b2, wh, bh, lo, hi)

    # Thin slices over the lane-dense slab (XLA fuses these with consumers).
    mean = fused[:B, :out_size]
    log_std = fused[:B, out_size:2 * out_size]
    return mean, log_std


def init_params(key, input_size, hidden_size, output_size):
    """Deterministic PyTorch-style init: U(-1/sqrt(fan_in), 1/sqrt(fan_in))."""
    def linear(k, fan_in, fan_out):
        kw, kb = jax.random.split(k)
        bound = 1.0 / jnp.sqrt(fan_in)
        w = jax.random.uniform(kw, (fan_out, fan_in), jnp.float32, -bound, bound)
        b = jax.random.uniform(kb, (fan_out,), jnp.float32, -bound, bound)
        return w, b

    k1, k2, k3, k4 = jax.random.split(key, 4)
    fc1_w, fc1_b = linear(k1, input_size, hidden_size)
    fc2_w, fc2_b = linear(k2, hidden_size, hidden_size)
    mean_w, mean_b = linear(k3, hidden_size, output_size)
    log_std_w, log_std_b = linear(k4, hidden_size, output_size)
    return {
        "fc1_w": fc1_w, "fc1_b": fc1_b,
        "fc2_w": fc2_w, "fc2_b": fc2_b,
        "mean_w": mean_w, "mean_b": mean_b,
        "log_std_w": log_std_w, "log_std_b": log_std_b,
    }


def reference_forward(state, p):
    x = jnp.maximum(state @ p["fc1_w"].T + p["fc1_b"], 0.0)
    x = jnp.maximum(x @ p["fc2_w"].T + p["fc2_b"], 0.0)
    mean = x @ p["mean_w"].T + p["mean_b"]
    log_std = jnp.clip(x @ p["log_std_w"].T + p["log_std_b"],
                       LOG_SIG_MIN, LOG_SIG_MAX)
    return mean, log_std


# TODO(synk): SACActor.sample() (Normal rsample / log_prob / softmax) is not part
# of forward(); implement in plain JAX on top of (mean, log_std) if needed.

if __name__ == "__main__":
    input_size, hidden_size, output_size = 16, 32, 8
    batch = 4

    key = jax.random.PRNGKey(0)
    k_params, k_state, k_big = jax.random.split(key, 3)
    params = init_params(k_params, input_size, hidden_size, output_size)
    state = jax.random.normal(k_state, (batch, input_size), jnp.float32)

    ref_mean, ref_log_std = reference_forward(state, params)

    # --- f32 operands: bit-tight against the reference ---------------------
    prepped_f32 = prepare_params(params, compute_dtype=jnp.float32)
    mean, log_std = sac_actor_forward(state, prepped_f32)
    jax.block_until_ready((mean, log_std))
    assert mean.shape == (batch, output_size)
    assert log_std.shape == (batch, output_size)
    assert jnp.allclose(mean, ref_mean, atol=1e-5), "mean mismatch (f32)"
    assert jnp.allclose(log_std, ref_log_std, atol=1e-5), "log_std mismatch (f32)"

    # --- bf16 MXU operands + bf16 output (f32 accum/elementwise): loose ----
    prepped_bf16 = prepare_params(params, compute_dtype=jnp.bfloat16)
    mean_b, log_std_b = sac_actor_forward(state, prepped_bf16,
                                          out_dtype=jnp.bfloat16)
    jax.block_until_ready((mean_b, log_std_b))
    assert jnp.allclose(mean_b.astype(jnp.float32), ref_mean,
                        rtol=3e-2, atol=3e-2), "mean mismatch (bf16)"
    assert jnp.allclose(log_std_b.astype(jnp.float32), ref_log_std,
                        rtol=3e-2, atol=3e-2), "log_std mismatch (bf16)"

    # --- larger, unaligned batch: exercises padding + 2-step grid split ----
    big_batch = 300
    big_state = jax.random.normal(k_big, (big_batch, input_size), jnp.float32)
    mean_big, log_std_big = sac_actor_forward(big_state, prepped_f32)
    jax.block_until_ready((mean_big, log_std_big))
    ref_mean_big, ref_log_std_big = reference_forward(big_state, params)
    assert mean_big.shape == (big_batch, output_size)
    assert jnp.allclose(mean_big, ref_mean_big, atol=1e-5), "mean mismatch (big)"
    assert jnp.allclose(log_std_big, ref_log_std_big, atol=1e-5), \
        "log_std mismatch (big)"

    print("KERNEL_OK")
</pallas_src>

<mosaic_0001>
module attributes {stable_mosaic.version = 11 : i64} {
  func.func @sac_actor_kernel(%arg0: i32, %arg1: memref<8x16xf32, #tpu.memory_space<vmem>>, %arg2: memref<16x128xf32, #tpu.memory_space<vmem>>, %arg3: memref<1x128xf32, #tpu.memory_space<vmem>>, %arg4: memref<128x128xf32, #tpu.memory_space<vmem>>, %arg5: memref<1x128xf32, #tpu.memory_space<vmem>>, %arg6: memref<128x128xf32, #tpu.memory_space<vmem>>, %arg7: memref<1x128xf32, #tpu.memory_space<vmem>>, %arg8: memref<1x128xf32, #tpu.memory_space<vmem>>, %arg9: memref<1x128xf32, #tpu.memory_space<vmem>>, %arg10: memref<8x128xf32, #tpu.memory_space<vmem>>) attributes {dimension_semantics = [#tpu.dimension_semantics<parallel>], iteration_bounds = array<i64: 1>, scalar_prefetch = 0 : i64, scratch_operands = 0 : i64, tpu.core_type = #tpu.core_type<tc>, window_params = [{transform_indices = @transform_0, window_bounds = array<i64: 8, 16>}, {pipeline_mode = #tpu.pipeline_mode<synchronous>, transform_indices = @transform_1, window_bounds = array<i64: 16, 128>}, {pipeline_mode = #tpu.pipeline_mode<synchronous>, transform_indices = @transform_2, window_bounds = array<i64: 1, 128>}, {pipeline_mode = #tpu.pipeline_mode<synchronous>, transform_indices = @transform_3, window_bounds = array<i64: 128, 128>}, {pipeline_mode = #tpu.pipeline_mode<synchronous>, transform_indices = @transform_4, window_bounds = array<i64: 1, 128>}, {pipeline_mode = #tpu.pipeline_mode<synchronous>, transform_indices = @transform_5, window_bounds = array<i64: 128, 128>}, {pipeline_mode = #tpu.pipeline_mode<synchronous>, transform_indices = @transform_6, window_bounds = array<i64: 1, 128>}, {pipeline_mode = #tpu.pipeline_mode<synchronous>, transform_indices = @transform_7, window_bounds = array<i64: 1, 128>}, {pipeline_mode = #tpu.pipeline_mode<synchronous>, transform_indices = @transform_8, window_bounds = array<i64: 1, 128>}, {transform_indices = @transform_9, window_bounds = array<i64: 8, 128>}]} {
    %c0 = arith.constant 0 : index
    %c0_0 = arith.constant 0 : index
    %0 = vector.load %arg1[%c0, %c0_0] : memref<8x16xf32, #tpu.memory_space<vmem>>, vector<8x16xf32>
    %c0_1 = arith.constant 0 : index
    %c0_2 = arith.constant 0 : index
    %1 = vector.load %arg2[%c0_1, %c0_2] : memref<16x128xf32, #tpu.memory_space<vmem>>, vector<16x128xf32>
    %cst = arith.constant dense<0.000000e+00> : vector<8x128xf32>
    %2 = tpu.matmul %0, %1, %cst {dimension_numbers = #tpu.dot_dimension_numbers<[1], [0], [0], [1], [0, 0, 1, 1], [], []>} : vector<8x16xf32>, vector<16x128xf32>, vector<8x128xf32> -> vector<8x128xf32>
    %c0_3 = arith.constant 0 : index
    %c0_4 = arith.constant 0 : index
    %3 = vector.load %arg3[%c0_3, %c0_4] : memref<1x128xf32, #tpu.memory_space<vmem>>, vector<1x128xf32>
    %4 = vector.broadcast %3 : vector<1x128xf32> to vector<8x128xf32>
    %5 = arith.addf %2, %4 : vector<8x128xf32>
    %cst_5 = arith.constant 0.000000e+00 : f32
    %6 = vector.broadcast %cst_5 : f32 to vector<8x128xf32>
    %7 = arith.maximumf %5, %6 : vector<8x128xf32>
    %c0_6 = arith.constant 0 : index
    %c0_7 = arith.constant 0 : index
    %8 = vector.load %arg4[%c0_6, %c0_7] : memref<128x128xf32, #tpu.memory_space<vmem>>, vector<128x128xf32>
    %cst_8 = arith.constant dense<0.000000e+00> : vector<8x128xf32>
    %9 = tpu.matmul %7, %8, %cst_8 {dimension_numbers = #tpu.dot_dimension_numbers<[1], [0], [0], [1], [0, 0, 1, 1], [], []>} : vector<8x128xf32>, vector<128x128xf32>, vector<8x128xf32> -> vector<8x128xf32>
    %c0_9 = arith.constant 0 : index
    %c0_10 = arith.constant 0 : index
    %10 = vector.load %arg5[%c0_9, %c0_10] : memref<1x128xf32, #tpu.memory_space<vmem>>, vector<1x128xf32>
    %11 = vector.broadcast %10 : vector<1x128xf32> to vector<8x128xf32>
    %12 = arith.addf %9, %11 : vector<8x128xf32>
    %cst_11 = arith.constant 0.000000e+00 : f32
    %13 = vector.broadcast %cst_11 : f32 to vector<8x128xf32>
    %14 = arith.maximumf %12, %13 : vector<8x128xf32>
    %c0_12 = arith.constant 0 : index
    %c0_13 = arith.constant 0 : index
    %15 = vector.load %arg6[%c0_12, %c0_13] : memref<128x128xf32, #tpu.memory_space<vmem>>, vector<128x128xf32>
    %cst_14 = arith.constant dense<0.000000e+00> : vector<8x128xf32>
    %16 = tpu.matmul %14, %15, %cst_14 {dimension_numbers = #tpu.dot_dimension_numbers<[1], [0], [0], [1], [0, 0, 1, 1], [], []>} : vector<8x128xf32>, vector<128x128xf32>, vector<8x128xf32> -> vector<8x128xf32>
    %c0_15 = arith.constant 0 : index
    %c0_16 = arith.constant 0 : index
    %17 = vector.load %arg7[%c0_15, %c0_16] : memref<1x128xf32, #tpu.memory_space<vmem>>, vector<1x128xf32>
    %18 = vector.broadcast %17 : vector<1x128xf32> to vector<8x128xf32>
    %19 = arith.addf %16, %18 : vector<8x128xf32>
    %c0_17 = arith.constant 0 : index
    %c0_18 = arith.constant 0 : index
    %20 = vector.load %arg8[%c0_17, %c0_18] : memref<1x128xf32, #tpu.memory_space<vmem>>, vector<1x128xf32>
    %21 = vector.broadcast %20 : vector<1x128xf32> to vector<8x128xf32>
    %22 = arith.maximumf %19, %21 : vector<8x128xf32>
    %c0_19 = arith.constant 0 : index
    %c0_20 = arith.constant 0 : index
    %23 = vector.load %arg9[%c0_19, %c0_20] : memref<1x128xf32, #tpu.memory_space<vmem>>, vector<1x128xf32>
    %24 = vector.broadcast %23 : vector<1x128xf32> to vector<8x128xf32>
    %25 = arith.minimumf %22, %24 : vector<8x128xf32>
    %c0_21 = arith.constant 0 : index
    %c0_22 = arith.constant 0 : index
    %26 = vector.load %arg10[%c0_21, %c0_22] : memref<8x128xf32, #tpu.memory_space<vmem>>, vector<8x128xf32>
    tpu.vector_store %arg10[%c0_21, %c0_22], %25 {strides = array<i32>} : memref<8x128xf32, #tpu.memory_space<vmem>>, vector<8x128xf32>,
    return
  }
  func.func @transform_0(%arg0: i32) -> (i32, i32) {
    %c0_i32 = arith.constant 0 : i32
    %c0_i32_0 = arith.constant 0 : i32
    return %arg0, %c0_i32 : i32, i32
  }
  func.func @transform_1(%arg0: i32) -> (i32, i32) {
    %c0_i32 = arith.constant 0 : i32
    %c0_i32_0 = arith.constant 0 : i32
    %c0_i32_1 = arith.constant 0 : i32
    return %c0_i32, %c0_i32_0 : i32, i32
  }
  func.func @transform_2(%arg0: i32) -> (i32, i32) {
    %c0_i32 = arith.constant 0 : i32
    %c0_i32_0 = arith.constant 0 : i32
    %c0_i32_1 = arith.constant 0 : i32
    return %c0_i32, %c0_i32_0 : i32, i32
  }
  func.func @transform_3(%arg0: i32) -> (i32, i32) {
    %c0_i32 = arith.constant 0 : i32
    %c0_i32_0 = arith.constant 0 : i32
    %c0_i32_1 = arith.constant 0 : i32
    return %c0_i32, %c0_i32_0 : i32, i32
  }
  func.func @transform_4(%arg0: i32) -> (i32, i32) {
    %c0_i32 = arith.constant 0 : i32
    %c0_i32_0 = arith.constant 0 : i32
    %c0_i32_1 = arith.constant 0 : i32
    return %c0_i32, %c0_i32_0 : i32, i32
  }
  func.func @transform_5(%arg0: i32) -> (i32, i32) {
    %c0_i32 = arith.constant 0 : i32
    %c0_i32_0 = arith.constant 0 : i32
    %c0_i32_1 = arith.constant 0 : i32
    return %c0_i32, %c0_i32_0 : i32, i32
  }
  func.func @transform_6(%arg0: i32) -> (i32, i32) {
    %c0_i32 = arith.constant 0 : i32
    %c0_i32_0 = arith.constant 0 : i32
    %c0_i32_1 = arith.constant 0 : i32
    return %c0_i32, %c0_i32_0 : i32, i32
  }
  func.func @transform_7(%arg0: i32) -> (i32, i32) {
    %c0_i32 = arith.constant 0 : i32
    %c0_i32_0 = arith.constant 0 : i32
    %c0_i32_1 = arith.constant 0 : i32
    return %c0_i32, %c0_i32_0 : i32, i32
  }
  func.func @transform_8(%arg0: i32) -> (i32, i32) {
    %c0_i32 = arith.constant 0 : i32
    %c0_i32_0 = arith.constant 0 : i32
    %c0_i32_1 = arith.constant 0 : i32
    return %c0_i32, %c0_i32_0 : i32, i32
  }
  func.func @transform_9(%arg0: i32) -> (i32, i32) {
    %c0_i32 = arith.constant 0 : i32
    %c0_i32_0 = arith.constant 0 : i32
    return %arg0, %c0_i32 : i32, i32
  }
}

</mosaic_0001>

<bundles_post_ra>
// kernel: tpu_custom_call.1
= control target key start
LH: loop header
LB: loop body
LE: loop exit
PB: predicated region body
PF: predicated region fallthrough
CT: control target
= control target key end

     0   :  { %14 = vsyncpa [#allocation3], 0  ;;  %s855_s0 = inlined_call_operand.hbm [shape: f32[8,16], index: 0, kind: input, shape index: {}]   ;;  %s856_s1 = inlined_call_operand.hbm [shape: f32[16,128], index: 1, kind: input, shape index: {}]   ;;  %s857_s2 = inlined_call_operand.vmem [shape: f32[1,128], index: 2, kind: input, shape index: {}]   ;;  %s858_s3 = inlined_call_operand.hbm [shape: f32[128,128], index: 3, kind: input, shape index: {}]   ;;  %s859_s4 = inlined_call_operand.vmem [shape: f32[1,128], index: 4, kind: input, shape index: {}]   ;;  %s860_s5 = inlined_call_operand.hbm [shape: f32[128,128], index: 5, kind: input, shape index: {}]   ;;  %s861_s6 = inlined_call_operand.vmem [shape: f32[1,128], index: 6, kind: input, shape index: {}]   ;;  %s862_s7 = inlined_call_operand.vmem [shape: f32[1,128], index: 7, kind: input, shape index: {}]   ;;  %s863_s8 = inlined_call_operand.vmem [shape: f32[1,128], index: 8, kind: input, shape index: {}]   ;;  %s864_s9 = inlined_call_operand.hbm [shape: f32[8,128], index: 9, kind: output, shape index: {}]  }
   0x1   :  { %15 = vsyncpa [#allocation6], 0 }
   0x2   :  { %16 = vsyncpa [#allocation9], 0 }
   0x3   :  { %17 = vsyncpa [#allocation4], 0  ;;  %s691_s30 = smov [#allocation5]   ;;  %s573_s13 = scalar_lea.hbm %s856_s1, 256 }
   0x4   :  { %s33_s10 = sshll.u32 %s691_s30, 4  ;;  %p574_p0 = scmp.ne.s32.totalorder %s856_s1, %s573_s13  ;;  %s34_s10 = int_to_ptr.vmem [resolvable:$true] %s33_s10 }
   0x5   :  { %p577_p1 = scmp.lt.u32.totalorder %s573_s13, %s856_s1 }
   0x7   :  { %p579_p2 = pnand %p577_p1, %p574_p0 }
   0x9   :  { %582 = shalt.err (!%p579_p2)
}
   0xa   :  { %s583_s18 = scalar_lea.vmem %s34_s10, 256  ;;  %p588_p4 = scmp.lt.s32.totalorder %s34_s10, %s34_s10 }
   0xb   :  { %p584_p3 = scmp.ne.s32.totalorder %s34_s10, %s583_s18  ;;  %p589_p5 = scmp.lt.s32.totalorder %s583_s18, %s583_s18 }
   0xd   :  { %p590_p6 = por %p589_p5, %p588_p4 }
   0xf   :  { %p591_p7 = pnand %p590_p6, %p584_p3 }
  0x11   :  { %594 = shalt.err (!%p591_p7)
}
  0x12   :  { %s692_s19 = smov 128   ;;  %s693_s20 = smov 8  }
  0x13   :  { %39 = dma.hbm_to_vmem [thread:$0]  %s856_s1, 256, %s34_s10, [#allocation6], %s692_s19, %s692_s19, %s693_s20  }
  0x14   :  { %s694_s23 = smov [#allocation2]   ;;  %s695_s25 = smov [#allocation7]  }
  0x15   :  { %s24_s24 = sshll.u32 %s694_s23, 4  ;;  %s47_s26 = sshll.u32 %s695_s25, 4  ;;  %s25_s24 = int_to_ptr.vmem [resolvable:$true] %s24_s24  ;;  %s48_s26 = int_to_ptr.vmem [resolvable:$true] %s47_s26 }
  0x16   :  { %s595_s29 = scalar_lea.hbm %s855_s0, 128 }
  0x17   :  { %p596_p8 = scmp.ne.s32.totalorder %s855_s0, %s595_s29  ;;  %p599_p9 = scmp.lt.u32.totalorder %s595_s29, %s855_s0 }
  0x19   :  { %p601_p10 = pnand %p599_p9, %p596_p8 }
  0x1b   :  { %604 = shalt.err (!%p601_p10)
}
  0x1c   :  { %s605_s1 = scalar_lea.vmem %s25_s24, 128  ;;  %p610_p12 = scmp.lt.s32.totalorder %s25_s24, %s25_s24 }
  0x1d   :  { %p606_p11 = scmp.ne.s32.totalorder %s25_s24, %s605_s1  ;;  %p611_p13 = scmp.lt.s32.totalorder %s605_s1, %s605_s1 }
  0x1f   :  { %p612_p0 = por %p611_p13, %p610_p12 }
  0x21   :  { %p613_p1 = pnand %p612_p0, %p606_p11 }
  0x23   :  { %616 = shalt.err (!%p613_p1)
}
  0x24   :  { %27 = dma.hbm_to_vmem [thread:$0]  %s855_s0, 128, %s25_s24, [#allocation3]  }
  0x25   :  { %s617_s17 = scalar_lea.hbm %s858_s3, 2048 }
  0x26   :  { %p618_p2 = scmp.ne.s32.totalorder %s858_s3, %s617_s17  ;;  %p621_p3 = scmp.lt.u32.totalorder %s617_s17, %s858_s3 }
  0x28   :  { %p623_p4 = pnand %p621_p3, %p618_p2 }
  0x2a   :  { %626 = shalt.err (!%p623_p4)
}
  0x2b   :  { %s627_s25 = scalar_lea.vmem %s48_s26, 2048  ;;  %p632_p6 = scmp.lt.s32.totalorder %s48_s26, %s48_s26 }
  0x2c   :  { %p628_p5 = scmp.ne.s32.totalorder %s48_s26, %s627_s25  ;;  %p633_p7 = scmp.lt.s32.totalorder %s627_s25, %s627_s25 }
  0x2e   :  { %p634_p8 = por %p633_p7, %p632_p6 }
  0x30   :  { %p635_p9 = pnand %p634_p8, %p628_p5 }
  0x32   :  { %638 = shalt.err (!%p635_p9)
}
  0x33   :  { %53 = dma.hbm_to_vmem [thread:$0]  %s858_s3, 2048, %s48_s26, [#allocation6], %s692_s19, %s692_s19, %s693_s20  }
  0x34   :  { %s696_s27 = smov [#allocation8]   ;;  %s639_s11 = scalar_lea.hbm %s860_s5, 2048 }
  0x35   :  { %s61_s28 = sshll.u32 %s696_s27, 4  ;;  %p640_p10 = scmp.ne.s32.totalorder %s860_s5, %s639_s11  ;;  %s62_s28 = int_to_ptr.vmem [resolvable:$true] %s61_s28 }
  0x36   :  { %p643_p11 = scmp.lt.u32.totalorder %s639_s11, %s860_s5 }
  0x38   :  { %p645_p12 = pnand %p643_p11, %p640_p10 }
  0x3a   :  { %648 = shalt.err (!%p645_p12)
}
  0x3b   :  { %s649_s14 = scalar_lea.vmem %s62_s28, 2048  ;;  %p654_p0 = scmp.lt.s32.totalorder %s62_s28, %s62_s28 }
  0x3c   :  { %p650_p13 = scmp.ne.s32.totalorder %s62_s28, %s649_s14  ;;  %p655_p1 = scmp.lt.s32.totalorder %s649_s14, %s649_s14 }
  0x3e   :  { %p656_p2 = por %p655_p1, %p654_p0 }
  0x40   :  { %p657_p3 = pnand %p656_p2, %p650_p13 }
  0x42   :  { %660 = shalt.err (!%p657_p3)
}
  0x43   :  { %67 = dma.hbm_to_vmem [thread:$0]  %s860_s5, 2048, %s62_s28, [#allocation9], %s692_s19, %s692_s19, %s693_s20  }
  0x44   :  { %683 = dma.done.wait [#allocation3], 128  }
  0x45   :  { %684 = vsyncadd [#allocation3], 4294967168 }
  0x46   :  { %685 = dma.done.wait [#allocation6], 2304  }
  0x47   :  { %686 = vsyncadd [#allocation6], 4294964992 }
  0x48   :  { %687 = dma.done.wait [#allocation9], 2048  }
  0x49   :  { %688 = vsyncadd [#allocation9], 4294965248  ;;  %v697_v0 = vmov 0.0|0.0   ;;  %vm698_vm0 = vmmov 0   ;;  %v699_v1 = vmov 0.0   ;;  %v87_v2 = vld [vmem:[#allocation5] sm:$0xff] }
  0x4a   :  { %512 = vmatprep.subr.bf16.mxu0 %v697_v0  ;;  %439 = vmatprep.mubr.msk.f32.mxu0 %vm698_vm0, %v699_v1  ;;  %v88_v3 = vld [vmem:[#allocation5 + $0x8] sm:$0xff]  ;;  %v171_v5 = vld [vmem:[#allocation7] sm:$0xff]  ;;  %v172_v6 = vld [vmem:[#allocation7 + $0x8] sm:$0xff]  ;;  %vm96_vm1 = vcmask 130048  }
  0x4b   :  { %515 = vmatprep.subr.bf16.mxu1 %v697_v0  ;;  %474 = vmatprep.mubr.msk.f32.mxu1 %vm698_vm0, %v699_v1  ;;  %v513_v4 = vpack.c.bf16 %v88_v3, %v87_v2  ;;  %v173_v7 = vld [vmem:[#allocation7 + $0x10] sm:$0xff]  ;;  %v516_v8 = vpack.c.bf16 %v172_v6, %v171_v5  ;;  %v174_v9 = vld [vmem:[#allocation7 + $0x18] sm:$0xff]  ;;  %v86_v10 = vld [vmem:[#allocation2] sm:$0xff] }
  0x4c   :  { %v519_v11 = vpack.c.bf16 %v174_v9, %v173_v7  ;;  %v175_v12 = vld [vmem:[#allocation7 + $0x20] sm:$0xff]  ;;  %v176_v13 = vld [vmem:[#allocation7 + $0x28] sm:$0xff]  ;;  %v177_v15 = vld [vmem:[#allocation7 + $0x30] sm:$0xff] }
  0x4d   :  { %514 = vmatpush3.bf16.msra.mxu0 %v513_v4  ;;  %517 = vmatpush3.bf16.msra.mxu1 %v516_v8  ;;  %v522_v14 = vpack.c.bf16 %v176_v13, %v175_v12  ;;  %v178_v16 = vld [vmem:[#allocation7 + $0x38] sm:$0xff]  ;;  %v179_v18 = vld [vmem:[#allocation7 + $0x40] sm:$0xff]  ;;  %v180_v19 = vld [vmem:[#allocation7 + $0x48] sm:$0xff] }
  0x4e   :  { %539 = vmatprep.subr.bf16.mxu0 %v697_v0  ;;  %518 = vmatprep.subr.bf16.mxu1 %v697_v0  ;;  %v525_v17 = vpack.c.bf16 %v178_v16, %v177_v15  ;;  %v528_v20 = vpack.c.bf16 %v180_v19, %v179_v18  ;;  %v181_v21 = vld [vmem:[#allocation7 + $0x50] sm:$0xff]  ;;  %v182_v22 = vld [vmem:[#allocation7 + $0x58] sm:$0xff]  ;;  %v183_v24 = vld [vmem:[#allocation7 + $0x60] sm:$0xff] }
  0x4f   :  { %v531_v23 = vpack.c.bf16 %v182_v22, %v181_v21  ;;  %v184_v25 = vld [vmem:[#allocation7 + $0x68] sm:$0xff]  ;;  %v185_v27 = vld [vmem:[#allocation7 + $0x70] sm:$0xff]  ;;  %v186_v28 = vld [vmem:[#allocation7 + $0x78] sm:$0xff] }
  0x50   :  { %440 = vmatmul.mubr.msk.f32.vlgmr.msra.gmra.mrb[0].mxu0 %vm96_vm1, %v86_v10  ;;  %v534_v26 = vpack.c.bf16 %v184_v25, %v183_v24  ;;  %v537_v29 = vpack.c.bf16 %v186_v28, %v185_v27  ;;  %v265_v30 = vld [vmem:[#allocation8] sm:$0xff]  ;;  %v266_v31 = vld [vmem:[#allocation8 + $0x8] sm:$0xff]  ;;  %v267_v32 = vld [vmem:[#allocation8 + $0x10] sm:$0xff] }
  0x51   :  { %509 = vmatprep.mubr.msk.f32.mxu0 %vm698_vm0, %v699_v1  ;;  %520 = vmatpush3.bf16.msra.mxu1 %v519_v11  ;;  %v540_v33 = vpack.c.bf16 %v266_v31, %v265_v30  ;;  %v268_v34 = vld [vmem:[#allocation8 + $0x18] sm:$0xff]  ;;  %v269_v36 = vld [vmem:[#allocation8 + $0x20] sm:$0xff]  ;;  %v270_v37 = vld [vmem:[#allocation8 + $0x28] sm:$0xff] }
  0x52   :  { %521 = vmatprep.subr.bf16.mxu1 %v697_v0  ;;  %v543_v35 = vpack.c.bf16 %v268_v34, %v267_v32  ;;  %v546_v38 = vpack.c.bf16 %v270_v37, %v269_v36  ;;  %v271_v39 = vld [vmem:[#allocation8 + $0x30] sm:$0xff]  ;;  %v272_v40 = vld [vmem:[#allocation8 + $0x38] sm:$0xff]  ;;  %v273_v42 = vld [vmem:[#allocation8 + $0x40] sm:$0xff] }
  0x53   :  { %541 = vmatpush3.bf16.msra.mxu0 %v540_v33  ;;  %v549_v41 = vpack.c.bf16 %v272_v40, %v271_v39  ;;  %v274_v43 = vld [vmem:[#allocation8 + $0x48] sm:$0xff]  ;;  %v275_v45 = vld [vmem:[#allocation8 + $0x50] sm:$0xff]  ;;  %v276_v46 = vld [vmem:[#allocation8 + $0x58] sm:$0xff] }
  0x54   :  { %542 = vmatprep.subr.bf16.mxu0 %v697_v0  ;;  %v552_v44 = vpack.c.bf16 %v274_v43, %v273_v42  ;;  %v555_v47 = vpack.c.bf16 %v276_v46, %v275_v45  ;;  %v277_v48 = vld [vmem:[#allocation8 + $0x60] sm:$0xff]  ;;  %v278_v49 = vld [vmem:[#allocation8 + $0x68] sm:$0xff]  ;;  %v279_v56 = vld [vmem:[#allocation8 + $0x70] sm:$0xff] }
  0x55   :  { %523 = vmatpush3.bf16.msra.mxu1 %v522_v14  ;;  %v558_v50 = vpack.c.bf16 %v278_v49, %v277_v48  ;;  %v392_v51 = vld [vmem:[%s857_s2] ss:$0 sm:$0xff]  ;;  %v280_v57 = vld [vmem:[#allocation8 + $0x78] sm:$0xff] }
  0x56   :  { %524 = vmatprep.subr.bf16.mxu1 %v697_v0  ;;  %v561_v58 = vpack.c.bf16 %v280_v57, %v279_v56  ;;  %v394_v59 = vld [vmem:[%s859_s4] ss:$0 sm:$0xff]  ;;  %s700_s4 = smov [#allocation10]  }
  0x57   :  { %544 = vmatpush3.bf16.msra.mxu0 %v543_v35  ;;  %v396_v2 = vld [vmem:[%s862_s7] ss:$0 sm:$0xff]  ;;  %s381_s23 = sshll.u32 %s700_s4, 4  ;;  %s382_s23 = int_to_ptr.vmem [resolvable:$true] %s381_s23 }
  0x58   :  { %545 = vmatprep.subr.bf16.mxu0 %v697_v0  ;;  %v397_v5 = vld [vmem:[%s863_s8] ss:$0 sm:$0xff]  ;;  %s661_s25 = scalar_lea.vmem %s382_s23, 128  ;;  %p666_p5 = scmp.lt.s32.totalorder %s382_s23, %s382_s23 }
  0x59   :  { %526 = vmatpush3.bf16.msra.mxu1 %v525_v17  ;;  %p662_p4 = scmp.ne.s32.totalorder %s382_s23, %s661_s25  ;;  %p667_p6 = scmp.lt.s32.totalorder %s661_s25, %s661_s25 }
  0x5a   :  { %527 = vmatprep.subr.bf16.mxu1 %v697_v0 }
  0x5b   :  { %547 = vmatpush3.bf16.msra.mxu0 %v546_v38  ;;  %p668_p7 = por %p667_p6, %p666_p5 }
  0x5c   :  { %548 = vmatprep.subr.bf16.mxu0 %v697_v0 }
  0x5d   :  { %529 = vmatpush3.bf16.msra.mxu1 %v528_v20  ;;  %p669_p8 = pnand %p668_p7, %p662_p4 }
  0x5e   :  { %530 = vmatprep.subr.bf16.mxu1 %v697_v0 }
  0x5f   :  { %550 = vmatpush3.bf16.msra.mxu0 %v549_v41 }
  0x60   :  { %551 = vmatprep.subr.bf16.mxu0 %v697_v0 }
  0x61   :  { %532 = vmatpush3.bf16.msra.mxu1 %v531_v23 }
  0x62   :  { %533 = vmatprep.subr.bf16.mxu1 %v697_v0 }
  0x63   :  { %553 = vmatpush3.bf16.msra.mxu0 %v552_v44 }
  0x64   :  { %554 = vmatprep.subr.bf16.mxu0 %v697_v0 }
  0x65   :  { %535 = vmatpush3.bf16.msra.mxu1 %v534_v26 }
  0x66   :  { %536 = vmatprep.subr.bf16.mxu1 %v697_v0 }
  0x67   :  { %556 = vmatpush3.bf16.msra.mxu0 %v555_v47 }
  0x68   :  { %557 = vmatprep.subr.bf16.mxu0 %v697_v0 }
  0x69   :  { %538 = vmatpush3.bf16.msra.mxu1 %v537_v29 }
  0x6b   :  { %559 = vmatpush3.bf16.msra.mxu0 %v558_v50 }
  0x6c   :  { %560 = vmatprep.subr.bf16.mxu0 %v697_v0  ;;  %v395_v0 = vld [vmem:[%s861_s6] ss:$0 sm:$0xff] }
  0x6f   :  { %562 = vmatpush3.bf16.msra.mxu0 %v561_v58 }
 0x123   :  { %v166_v52 = vpop.f32.mrb[0].mxu0 }
 0x124   :  { %v167_v53 = vadd.f32 %v392_v51, %v166_v52  ;;  %v441_v54 = vpop.f32.mrb[1].mxu0 }
 0x126   :  { %v170_v55 = vmax.f32 %v167_v53, 0.0 }
 0x128   :  { %475 = vmatmul.mubr.f32.vlgmr.msra.gmra.mrb[0].mxu1 %v170_v55 }
 0x1fb   :  { %v260_v60 = vpop.f32.mrb[0].mxu1 }
 0x1fc   :  { %v261_v61 = vadd.f32 %v394_v59, %v260_v60  ;;  %v476_v62 = vpop.f32.mrb[1].mxu1 }
 0x1fe   :  { %v264_v63 = vmax.f32 %v261_v61, 0.0 }
 0x200   :  { %510 = vmatmul.mubr.f32.vlgmr.msra.gmra.mrb[2].mxu0 %v264_v63 }
 0x2d3   :  { %v354_v1 = vpop.f32.mrb[2].mxu0 }
 0x2d4   :  { %v355_v3 = vadd.f32 %v395_v0, %v354_v1  ;;  %v511_v4 = vpop.f32.mrb[3].mxu0 }
 0x2d6   :  { %v365_v6 = vmax.f32 %v355_v3, %v396_v2 }
 0x2d8   :  { %v373_v7 = vmin.f32 %v365_v6, %v397_v5 }
 0x2da   :  { %374 = vst [vmem:[#allocation10] sm:$0xff] %v373_v7 }
 0x2db   :  { %672 = shalt.err (!%p669_p8)
}
 0x2dc   :  { %s673_s0 = scalar_lea.hbm %s864_s9, 128 }
 0x2dd   :  { %p674_p9 = scmp.ne.s32.totalorder %s864_s9, %s673_s0  ;;  %p677_p10 = scmp.lt.u32.totalorder %s673_s0, %s864_s9 }
 0x2df   :  { %p679_p11 = pnand %p677_p10, %p674_p9 }
 0x2e1   :  { %682 = shalt.err (!%p679_p11)
}
 0x2e2   :  { %384 = dma.vmem_to_hbm [thread:$0]  %s382_s23, 128, %s864_s9, [#allocation4]  }
 0x2e3   :  { %689 = dma.done.wait [#allocation4], 128  }
 0x2e4   :  { %690 = vsyncadd [#allocation4], 4294967168 }
 0x2e5   :  { %388 = vsyncpa [#allocation3], 1 }
 0x2e6   :  { %389 = vsyncpa [#allocation6], 1 }
 0x2e7   :  { %390 = vsyncpa [#allocation9], 1 }
 0x2e8   :  { %391 = vsyncpa [#allocation4], 1 }

</bundles_post_ra>
